<compile_context>
chip_gen: v6e
topology: v6e:2x2x1
jax: 0.10.0
libtpu: 0.0.40
codegen_flags: <defaults>
</compile_context>

<pallas_src>
import functools
import math

import jax
import jax.numpy as jnp
import numpy as np
from jax import lax
from jax.experimental import pallas as pl
from jax.experimental.pallas import tpu as pltpu

# Small, module-consistent example shapes (production dims just scale up).
B, S = 2, 8
DIM_MODEL = 32          # dim_model
DIM_FF = 64             # dim_feed_forward

_INV_SQRT2 = 0.7071067811865475
_SQRT_2_OVER_PI = math.sqrt(2.0 / math.pi)


def _round_up(x, m):
    return (x + m - 1) // m * m


def _gelu_exact(x):
    # torch.nn.GELU() default (erf-based).
    return 0.5 * x * (1.0 + lax.erf(x * _INV_SQRT2))


def _gelu_tanh(x):
    # EUP-friendly tanh approximation (torch GELU(approximate="tanh")).
    return 0.5 * x * (1.0 + jnp.tanh(_SQRT_2_OVER_PI * (x + 0.044715 * x * x * x)))


def ffn_kernel(x_ref, w1_ref, b1_ref, w2_ref, b2_ref, out_ref, h_ref, *,
               approximate):
    # x_ref:   (tile_n, d_pad)    bf16   (row tile of activations)
    # w1_ref:  (d_pad, dff_pad)   bf16   (resident: same block every step)
    # b1_ref:  (1, dff_pad)       f32
    # w2_ref:  (dff_pad, d_pad)   bf16   (resident)
    # b2_ref:  (1, d_pad)         f32
    # out_ref: (tile_n, d_pad)    f32    (lane-dense, unmasked stores)
    # h_ref:   (tile_n, dff_pad)  bf16   VMEM scratch (bounds vreg pressure)
    h = jnp.dot(x_ref[...], w1_ref[...], preferred_element_type=jnp.float32)
    h = h + b1_ref[...]
    h = _gelu_tanh(h) if approximate else _gelu_exact(h)
    h_ref[...] = h.astype(jnp.bfloat16)
    y = jnp.dot(h_ref[...], w2_ref[...], preferred_element_type=jnp.float32)
    out_ref[...] = y + b2_ref[...]


def prepare_ffn_params(w1, b1, w2, b2):
    """torch-Linear-layout params -> padded, MXU-ready params (done once).

    w1: (dff, d), b1: (dff,), w2: (d, dff), b2: (d,)
    Returns (in, out)-layout bf16 weights zero-padded to multiples of 128
    lanes, and f32 biases as (1, padded) rows, plus the dim bookkeeping.
    """
    dff, d = w1.shape
    d_pad = _round_up(d, 128)
    dff_pad = _round_up(dff, 128)

    w1_t = jnp.zeros((d_pad, dff_pad), jnp.float32).at[:d, :dff].set(w1.T)
    w2_t = jnp.zeros((dff_pad, d_pad), jnp.float32).at[:dff, :d].set(w2.T)
    b1_p = jnp.zeros((1, dff_pad), jnp.float32).at[0, :dff].set(b1)
    b2_p = jnp.zeros((1, d_pad), jnp.float32).at[0, :d].set(b2)

    return (w1_t.astype(jnp.bfloat16), b1_p, w2_t.astype(jnp.bfloat16), b2_p,
            d, dff, d_pad, dff_pad)


def pointwise_ffn(x, params, *, gelu_approximate=False, tile_n_max=256):
    """x: (B, S, dim_model) f32 -> (B, S, dim_model) f32."""
    w1p, b1p, w2p, b2p, d, dff, d_pad, dff_pad = params
    b_, s_, d_in = x.shape
    assert d_in == d, (d_in, d)
    n = b_ * s_

    # Row tile: multiple of 8 sublanes, capped; pad rows to a whole grid.
    tile_n = min(tile_n_max, _round_up(n, 8))
    n_pad = _round_up(n, tile_n)
    grid = (n_pad // tile_n,)

    x2d = x.reshape(n, d_in)
    x_pad = jnp.zeros((n_pad, d_pad), jnp.bfloat16)
    x_pad = x_pad.at[:n, :d_in].set(x2d.astype(jnp.bfloat16))

    flops = 2 * n_pad * d_pad * dff_pad + 2 * n_pad * dff_pad * d_pad
    bytes_accessed = (
        n_pad * d_pad * 2                              # x (bf16)
        + (d_pad * dff_pad + dff_pad * d_pad) * 2      # weights (bf16)
        + (dff_pad + d_pad) * 4                        # biases (f32)
        + n_pad * d_pad * 4                            # out (f32)
    )

    # VMEM budget from the actual tiles (double buffers + resident weights +
    # hidden scratch), v7x-safe cap at 64 MiB.
    vmem_bytes = (
        2 * tile_n * d_pad * 2                         # bf16 x tiles (x2 bufs)
        + 2 * tile_n * d_pad * 4                       # f32 out tiles (x2 bufs)
        + 2 * (d_pad * dff_pad + dff_pad * d_pad) * 2  # resident bf16 weights
        + 2 * (dff_pad + d_pad) * 4                    # biases
        + tile_n * dff_pad * 2                         # hidden scratch
        + (2 << 20)                                    # headroom
    )
    vmem_limit = int(min(max(vmem_bytes, 8 << 20), 64 << 20))

    kernel = functools.partial(ffn_kernel, approximate=gelu_approximate)

    y_pad = pl.pallas_call(
        kernel,
        out_shape=jax.ShapeDtypeStruct((n_pad, d_pad), jnp.float32),
        grid_spec=pltpu.PrefetchScalarGridSpec(
            num_scalar_prefetch=0,
            grid=grid,
            in_specs=[
                pl.BlockSpec((tile_n, d_pad), lambda i: (i, 0)),      # x tile
                pl.BlockSpec((d_pad, dff_pad), lambda i: (0, 0)),     # w1 (resident)
                pl.BlockSpec((1, dff_pad), lambda i: (0, 0)),         # b1 (resident)
                pl.BlockSpec((dff_pad, d_pad), lambda i: (0, 0)),     # w2 (resident)
                pl.BlockSpec((1, d_pad), lambda i: (0, 0)),           # b2 (resident)
            ],
            out_specs=pl.BlockSpec((tile_n, d_pad), lambda i: (i, 0)),
            scratch_shapes=[pltpu.VMEM((tile_n, dff_pad), jnp.bfloat16)],
        ),
        compiler_params=pltpu.CompilerParams(
            dimension_semantics=("parallel",),        # dual-TC sharding on v7x
            vmem_limit_bytes=vmem_limit,
        ),
        cost_estimate=pl.CostEstimate(
            flops=flops,
            transcendentals=n_pad * dff_pad,          # erf/tanh per hidden elem
            bytes_accessed=bytes_accessed,
        ),
    )(x_pad, w1p, b1p, w2p, b2p)

    return y_pad[:n, :d_in].reshape(b_, s_, d_in)


def ffn_ref(x, w1, b1, w2, b2):
    """Pure-JAX f32 reference mirroring the PyTorch forward (torch layout)."""
    h = jax.nn.gelu(x @ w1.T + b1, approximate=False)
    return h @ w2.T + b2


if __name__ == "__main__":
    key = jax.random.PRNGKey(0)
    kx, k1, k2, k3, k4 = jax.random.split(key, 5)

    x = jax.random.normal(kx, (B, S, DIM_MODEL), jnp.float32)
    scale = 0.02
    # torch Linear layout: weight (out_features, in_features), bias (out_features,)
    w1 = scale * jax.random.normal(k1, (DIM_FF, DIM_MODEL), jnp.float32)
    b1 = scale * jax.random.normal(k2, (DIM_FF,), jnp.float32)
    w2 = scale * jax.random.normal(k3, (DIM_MODEL, DIM_FF), jnp.float32)
    b2 = scale * jax.random.normal(k4, (DIM_MODEL,), jnp.float32)

    params = prepare_ffn_params(w1, b1, w2, b2)

    out = pointwise_ffn(x, params)
    out = jax.block_until_ready(out)

    ref = ffn_ref(x, w1, b1, w2, b2)
    # bf16 MXU operands with f32 accumulation vs pure-f32 reference.
    np.testing.assert_allclose(np.asarray(out), np.asarray(ref),
                               atol=1e-2, rtol=1e-2)

    print("KERNEL_OK")
</pallas_src>

<mosaic_0001>
module attributes {stable_mosaic.version = 11 : i64} {
  func.func @ffn_kernel(%arg0: i32, %arg1: memref<16x128xbf16, #tpu.memory_space<vmem>>, %arg2: memref<128x128xbf16, #tpu.memory_space<vmem>>, %arg3: memref<1x128xf32, #tpu.memory_space<vmem>>, %arg4: memref<128x128xbf16, #tpu.memory_space<vmem>>, %arg5: memref<1x128xf32, #tpu.memory_space<vmem>>, %arg6: memref<16x128xf32, #tpu.memory_space<vmem>>, %arg7: memref<16x128xbf16, #tpu.memory_space<vmem>>) attributes {dimension_semantics = [#tpu.dimension_semantics<parallel>], iteration_bounds = array<i64: 1>, scalar_prefetch = 0 : i64, scratch_operands = 1 : i64, tpu.core_type = #tpu.core_type<tc>, window_params = [{transform_indices = @transform_0, window_bounds = array<i64: 16, 128>}, {pipeline_mode = #tpu.pipeline_mode<synchronous>, transform_indices = @transform_1, window_bounds = array<i64: 128, 128>}, {pipeline_mode = #tpu.pipeline_mode<synchronous>, transform_indices = @transform_2, window_bounds = array<i64: 1, 128>}, {pipeline_mode = #tpu.pipeline_mode<synchronous>, transform_indices = @transform_3, window_bounds = array<i64: 128, 128>}, {pipeline_mode = #tpu.pipeline_mode<synchronous>, transform_indices = @transform_4, window_bounds = array<i64: 1, 128>}, {transform_indices = @transform_5, window_bounds = array<i64: 16, 128>}]} {
    %c0 = arith.constant 0 : index
    %c0_0 = arith.constant 0 : index
    %0 = vector.load %arg1[%c0, %c0_0] : memref<16x128xbf16, #tpu.memory_space<vmem>>, vector<16x128xbf16>
    %c0_1 = arith.constant 0 : index
    %c0_2 = arith.constant 0 : index
    %1 = vector.load %arg2[%c0_1, %c0_2] : memref<128x128xbf16, #tpu.memory_space<vmem>>, vector<128x128xbf16>
    %cst = arith.constant dense<0.000000e+00> : vector<16x128xf32>
    %2 = tpu.matmul %0, %1, %cst {dimension_numbers = #tpu.dot_dimension_numbers<[1], [0], [0], [1], [0, 0, 1, 1], [], []>} : vector<16x128xbf16>, vector<128x128xbf16>, vector<16x128xf32> -> vector<16x128xf32>
    %c0_3 = arith.constant 0 : index
    %c0_4 = arith.constant 0 : index
    %3 = vector.load %arg3[%c0_3, %c0_4] : memref<1x128xf32, #tpu.memory_space<vmem>>, vector<1x128xf32>
    %4 = vector.broadcast %3 : vector<1x128xf32> to vector<16x128xf32>
    %5 = arith.addf %2, %4 : vector<16x128xf32>
    %cst_5 = arith.constant 5.000000e-01 : f32
    %6 = vector.broadcast %cst_5 : f32 to vector<16x128xf32>
    %7 = arith.mulf %6, %5 : vector<16x128xf32>
    %cst_6 = arith.constant 0.707106769 : f32
    %8 = vector.broadcast %cst_6 : f32 to vector<16x128xf32>
    %9 = arith.mulf %5, %8 : vector<16x128xf32>
    %10 = math.erf %9 : vector<16x128xf32>
    %cst_7 = arith.constant 1.000000e+00 : f32
    %11 = vector.broadcast %cst_7 : f32 to vector<16x128xf32>
    %12 = arith.addf %11, %10 : vector<16x128xf32>
    %13 = arith.mulf %7, %12 : vector<16x128xf32>
    %14 = arith.truncf %13 : vector<16x128xf32> to vector<16x128xbf16>
    %c0_8 = arith.constant 0 : index
    %c0_9 = arith.constant 0 : index
    %15 = vector.load %arg7[%c0_8, %c0_9] : memref<16x128xbf16, #tpu.memory_space<vmem>>, vector<16x128xbf16>
    tpu.vector_store %arg7[%c0_8, %c0_9], %14 {strides = array<i32>} : memref<16x128xbf16, #tpu.memory_space<vmem>>, vector<16x128xbf16>,
    %c0_10 = arith.constant 0 : index
    %c0_11 = arith.constant 0 : index
    %16 = vector.load %arg7[%c0_10, %c0_11] : memref<16x128xbf16, #tpu.memory_space<vmem>>, vector<16x128xbf16>
    %c0_12 = arith.constant 0 : index
    %c0_13 = arith.constant 0 : index
    %17 = vector.load %arg4[%c0_12, %c0_13] : memref<128x128xbf16, #tpu.memory_space<vmem>>, vector<128x128xbf16>
    %cst_14 = arith.constant dense<0.000000e+00> : vector<16x128xf32>
    %18 = tpu.matmul %16, %17, %cst_14 {dimension_numbers = #tpu.dot_dimension_numbers<[1], [0], [0], [1], [0, 0, 1, 1], [], []>} : vector<16x128xbf16>, vector<128x128xbf16>, vector<16x128xf32> -> vector<16x128xf32>
    %c0_15 = arith.constant 0 : index
    %c0_16 = arith.constant 0 : index
    %19 = vector.load %arg5[%c0_15, %c0_16] : memref<1x128xf32, #tpu.memory_space<vmem>>, vector<1x128xf32>
    %20 = vector.broadcast %19 : vector<1x128xf32> to vector<16x128xf32>
    %21 = arith.addf %18, %20 : vector<16x128xf32>
    %c0_17 = arith.constant 0 : index
    %c0_18 = arith.constant 0 : index
    %22 = vector.load %arg6[%c0_17, %c0_18] : memref<16x128xf32, #tpu.memory_space<vmem>>, vector<16x128xf32>
    tpu.vector_store %arg6[%c0_17, %c0_18], %21 {strides = array<i32>} : memref<16x128xf32, #tpu.memory_space<vmem>>, vector<16x128xf32>,
    return
  }
  func.func @transform_0(%arg0: i32) -> (i32, i32) {
    %c0_i32 = arith.constant 0 : i32
    %c0_i32_0 = arith.constant 0 : i32
    return %arg0, %c0_i32 : i32, i32
  }
  func.func @transform_1(%arg0: i32) -> (i32, i32) {
    %c0_i32 = arith.constant 0 : i32
    %c0_i32_0 = arith.constant 0 : i32
    %c0_i32_1 = arith.constant 0 : i32
    return %c0_i32, %c0_i32_0 : i32, i32
  }
  func.func @transform_2(%arg0: i32) -> (i32, i32) {
    %c0_i32 = arith.constant 0 : i32
    %c0_i32_0 = arith.constant 0 : i32
    %c0_i32_1 = arith.constant 0 : i32
    return %c0_i32, %c0_i32_0 : i32, i32
  }
  func.func @transform_3(%arg0: i32) -> (i32, i32) {
    %c0_i32 = arith.constant 0 : i32
    %c0_i32_0 = arith.constant 0 : i32
    %c0_i32_1 = arith.constant 0 : i32
    return %c0_i32, %c0_i32_0 : i32, i32
  }
  func.func @transform_4(%arg0: i32) -> (i32, i32) {
    %c0_i32 = arith.constant 0 : i32
    %c0_i32_0 = arith.constant 0 : i32
    %c0_i32_1 = arith.constant 0 : i32
    return %c0_i32, %c0_i32_0 : i32, i32
  }
  func.func @transform_5(%arg0: i32) -> (i32, i32) {
    %c0_i32 = arith.constant 0 : i32
    %c0_i32_0 = arith.constant 0 : i32
    return %arg0, %c0_i32 : i32, i32
  }
}

</mosaic_0001>

<bundles_post_ra>
// kernel: tpu_custom_call.1
= control target key start
LH: loop header
LB: loop body
LE: loop exit
PB: predicated region body
PF: predicated region fallthrough
CT: control target
= control target key end

     0   :  { %10 = vsyncpa [#allocation4], 0  ;;  %s606_s0 = inlined_call_operand.hbm [shape: bf16[16,128], index: 0, kind: input, shape index: {}]   ;;  %s607_s1 = inlined_call_operand.hbm [shape: bf16[128,128], index: 1, kind: input, shape index: {}]   ;;  %s608_s2 = inlined_call_operand.vmem [shape: f32[1,128], index: 2, kind: input, shape index: {}]   ;;  %s609_s3 = inlined_call_operand.hbm [shape: bf16[128,128], index: 3, kind: input, shape index: {}]   ;;  %s610_s4 = inlined_call_operand.vmem [shape: f32[1,128], index: 4, kind: input, shape index: {}]   ;;  %s611_s5 = inlined_call_operand.hbm [shape: f32[16,128], index: 5, kind: output, shape index: {}]  }
   0x1   :  { %11 = vsyncpa [#allocation7], 0 }
   0x2   :  { %12 = vsyncpa [#allocation5], 0  ;;  %s548_s18 = smov [#allocation6]   ;;  %s549_s20 = smov [#allocation3]  }
   0x3   :  { %s30_s19 = sshll.u32 %s548_s18, 4  ;;  %s18_s21 = sshll.u32 %s549_s20, 4  ;;  %s31_s19 = int_to_ptr.vmem [resolvable:$true] %s30_s19  ;;  %s19_s21 = int_to_ptr.vmem [resolvable:$true] %s18_s21 }
   0x4   :  { %s470_s22 = scalar_lea.vmem %s31_s19, 1024  ;;  %p475_p1 = scmp.lt.s32.totalorder %s31_s19, %s31_s19 }
   0x5   :  { %p471_p0 = scmp.ne.s32.totalorder %s31_s19, %s470_s22  ;;  %p476_p2 = scmp.lt.s32.totalorder %s470_s22, %s470_s22 }
   0x7   :  { %p477_p3 = por %p476_p2, %p475_p1 }
   0x9   :  { %p478_p4 = pnand %p477_p3, %p471_p0 }
   0xb   :  { %481 = shalt.err (!%p478_p4)
}
   0xc   :  { %s550_s23 = smov 64   ;;  %s551_s24 = smov 4  }
   0xd   :  { %36 = dma.hbm_to_vmem [thread:$0]  %s607_s1, 1024, %s31_s19, [#allocation7], %s550_s23, %s550_s23, %s551_s24  }
   0xe   :  { %s490_s27 = scalar_lea.vmem %s19_s21, 128  ;;  %p495_p6 = scmp.lt.s32.totalorder %s19_s21, %s19_s21 }
   0xf   :  { %p491_p5 = scmp.ne.s32.totalorder %s19_s21, %s490_s27  ;;  %p496_p7 = scmp.lt.s32.totalorder %s490_s27, %s490_s27 }
  0x11   :  { %p497_p8 = por %p496_p7, %p495_p6 }
  0x13   :  { %p498_p9 = pnand %p497_p8, %p491_p5 }
  0x15   :  { %501 = shalt.err (!%p498_p9)
}
  0x16   :  { %24 = dma.hbm_to_vmem [thread:$0]  %s606_s0, 128, %s19_s21, [#allocation4], %s550_s23, %s550_s23, %s551_s24  }
  0x17   :  { %s552_s30 = smov [#allocation8]  }
  0x18   :  { %s44_s6 = sshll.u32 %s552_s30, 4  ;;  %s45_s6 = int_to_ptr.vmem [resolvable:$true] %s44_s6 }
  0x19   :  { %s510_s7 = scalar_lea.vmem %s45_s6, 1024  ;;  %p515_p11 = scmp.lt.s32.totalorder %s45_s6, %s45_s6 }
  0x1a   :  { %p511_p10 = scmp.ne.s32.totalorder %s45_s6, %s510_s7  ;;  %p516_p12 = scmp.lt.s32.totalorder %s510_s7, %s510_s7 }
  0x1c   :  { %p517_p13 = por %p516_p12, %p515_p11 }
  0x1e   :  { %p518_p0 = pnand %p517_p13, %p511_p10 }
  0x20   :  { %521 = shalt.err (!%p518_p0)
}
  0x21   :  { %50 = dma.hbm_to_vmem [thread:$0]  %s609_s3, 1024, %s45_s6, [#allocation7], %s550_s23, %s550_s23, %s551_s24  }
  0x22   :  { %542 = dma.done.wait [#allocation4], 128  }
  0x23   :  { %543 = vsyncadd [#allocation4], 4294967168 }
  0x24   :  { %544 = dma.done.wait [#allocation7], 2048  }
  0x25   :  { %545 = vsyncadd [#allocation7], 4294965248  ;;  %v553_v0 = vmov 0.0   ;;  %vm554_vm0 = vmmov 0   ;;  %v440_v1 = vld [vmem:[#allocation6 + $0x38] sm:$0xff]   ;;  %v441_v2 = vld [vmem:[#allocation6 + $0x30] sm:$0xff]  }
  0x26   :  { %390 = vmatprep.subr.bf16.mxu0 %v553_v0  ;;  %406 = vmatprep.mubr.msk.bf16.mxu0 %vm554_vm0, %v553_v0  ;;  %v442_v3 = vld [vmem:[#allocation6 + $0x28] sm:$0xff]   ;;  %v443_v4 = vld [vmem:[#allocation6 + $0x20] sm:$0xff]   ;;  %v444_v5 = vld [vmem:[#allocation6 + $0x18] sm:$0xff]   ;;  %s555_s10 = smov [#allocation9]  }
  0x27   :  { %410 = vmatprep.subr.bf16.mxu1 %v553_v0  ;;  %426 = vmatprep.mubr.msk.bf16.mxu1 %vm554_vm0, %v553_v0  ;;  %v445_v6 = vld [vmem:[#allocation6 + $0x10] sm:$0xff]   ;;  %v446_v7 = vld [vmem:[#allocation6 + $0x8] sm:$0xff]   ;;  %v447_v8 = vld [vmem:[#allocation6] sm:$0xff]   ;;  %s330_s11 = sshll.u32 %s555_s10, 4  ;;  %s331_s11 = int_to_ptr.vmem [resolvable:$true] %s330_s11 }
  0x28   :  { %391 = vmatpush3.bf16.msra.mxu0 %v440_v1  ;;  %v448_v9 = vld [vmem:[#allocation3] sm:$0xff]   ;;  %v450_v11 = vld [vmem:[#allocation8 + $0x30] sm:$0xff]   ;;  %v451_v12 = vld [vmem:[#allocation8 + $0x28] sm:$0xff]   ;;  %s522_s12 = scalar_lea.vmem %s331_s11, 256  ;;  %p527_p2 = scmp.lt.s32.totalorder %s331_s11, %s331_s11 }
  0x29   :  { %392 = vmatprep.subr.bf16.mxu0 %v553_v0  ;;  %v449_v10 = vld [vmem:[#allocation8 + $0x38] sm:$0xff]   ;;  %v452_v13 = vld [vmem:[#allocation8 + $0x20] sm:$0xff]   ;;  %v454_v15 = vld [vmem:[#allocation8 + $0x10] sm:$0xff]   ;;  %p523_p1 = scmp.ne.s32.totalorder %s331_s11, %s522_s12  ;;  %p528_p3 = scmp.lt.s32.totalorder %s522_s12, %s522_s12 }
  0x2a   :  { %411 = vmatpush3.bf16.msra.mxu1 %v449_v10  ;;  %v453_v14 = vld [vmem:[#allocation8 + $0x18] sm:$0xff]   ;;  %v455_v16 = vld [vmem:[#allocation8 + $0x8] sm:$0xff]   ;;  %v456_v17 = vld [vmem:[#allocation8] sm:$0xff]  }
  0x2b   :  { %412 = vmatprep.subr.bf16.mxu1 %v553_v0  ;;  %v343_v18 = vld [vmem:[%s608_s2] ss:$0 sm:$0xff]  ;;  %p529_p4 = por %p528_p3, %p527_p2 }
  0x2c   :  { %393 = vmatpush3.bf16.msra.mxu0 %v441_v2  ;;  %v355_v37 = vld [vmem:[%s610_s4] ss:$0 sm:$0xff] }
  0x2d   :  { %394 = vmatprep.subr.bf16.mxu0 %v553_v0  ;;  %p530_p5 = pnand %p529_p4, %p523_p1 }
  0x2e   :  { %413 = vmatpush3.bf16.msra.mxu1 %v450_v11 }
  0x2f   :  { %414 = vmatprep.subr.bf16.mxu1 %v553_v0 }
  0x30   :  { %395 = vmatpush3.bf16.msra.mxu0 %v442_v3 }
  0x31   :  { %396 = vmatprep.subr.bf16.mxu0 %v553_v0 }
  0x32   :  { %415 = vmatpush3.bf16.msra.mxu1 %v451_v12 }
  0x33   :  { %416 = vmatprep.subr.bf16.mxu1 %v553_v0 }
  0x34   :  { %397 = vmatpush3.bf16.msra.mxu0 %v443_v4 }
  0x35   :  { %398 = vmatprep.subr.bf16.mxu0 %v553_v0 }
  0x36   :  { %417 = vmatpush3.bf16.msra.mxu1 %v452_v13 }
  0x37   :  { %418 = vmatprep.subr.bf16.mxu1 %v553_v0 }
  0x38   :  { %399 = vmatpush3.bf16.msra.mxu0 %v444_v5 }
  0x39   :  { %400 = vmatprep.subr.bf16.mxu0 %v553_v0 }
  0x3a   :  { %419 = vmatpush3.bf16.msra.mxu1 %v453_v14 }
  0x3b   :  { %420 = vmatprep.subr.bf16.mxu1 %v553_v0 }
  0x3c   :  { %401 = vmatpush3.bf16.msra.mxu0 %v445_v6 }
  0x3d   :  { %402 = vmatprep.subr.bf16.mxu0 %v553_v0 }
  0x3e   :  { %421 = vmatpush3.bf16.msra.mxu1 %v454_v15 }
  0x3f   :  { %422 = vmatprep.subr.bf16.mxu1 %v553_v0 }
  0x40   :  { %403 = vmatpush3.bf16.msra.mxu0 %v446_v7 }
  0x41   :  { %404 = vmatprep.subr.bf16.mxu0 %v553_v0 }
  0x42   :  { %423 = vmatpush3.bf16.msra.mxu1 %v455_v16 }
  0x43   :  { %424 = vmatprep.subr.bf16.mxu1 %v553_v0 }
  0x44   :  { %405 = vmatpush3.bf16.msra.mxu0 %v447_v8 }
  0x46   :  { %425 = vmatpush3.bf16.msra.mxu1 %v456_v17 }
  0x47   :  { %407 = vmatmul.mubr.bf16.vlgmr.msra.gmra.mxu0 %v448_v9 }
 0x107   :  { %v176_v19 = vpop.f32.mrf.mxu0 }
 0x108   :  { %v177_v20 = vadd.f32 %v343_v18, %v176_v19 }
 0x109   :  { %v408_v21 = vpop.f32.mrf.mxu0 }
 0x10a   :  { %v185_v22 = vmul.f32 0.70710677, %v177_v20  ;;  %v183_v30 = vmul.f32 0.5, %v177_v20 }
 0x10b   :  { %v179_v23 = vpop.f32.mrf.mxu0 }
 0x10c   :  { %458 = verf.f32 %v185_v22  ;;  %v180_v24 = vadd.f32 %v343_v18, %v179_v23 }
 0x10d   :  { %v409_v25 = vpop.f32.mrf.mxu0 }
 0x10e   :  { %v186_v26 = vmul.f32 0.70710677, %v180_v24  ;;  %v184_v31 = vmul.f32 0.5, %v180_v24 }
 0x110   :  { %460 = verf.f32 %v186_v26 }
 0x119   :  { %v459_v27 = vpop.eup %458 }
 0x11a   :  { %v189_v28 = vadd.f32 1.0, %v459_v27 }
 0x11c   :  { %v191_v33 = vmul.f32 %v189_v28, %v183_v30 }
 0x11d   :  { %v461_v29 = vpop.eup %460 }
 0x11e   :  { %v190_v32 = vadd.f32 1.0, %v461_v29 }
 0x120   :  { %v192_v34 = vmul.f32 %v190_v32, %v184_v31 }
 0x122   :  { %v370_v35 = vpack.c.bf16 %v192_v34, %v191_v33 }
 0x124   :  { %371 = vst [vmem:[#allocation2] sm:$0xff] %v370_v35  }
 0x12b   :  { %v457_v36 = vld [vmem:[#allocation2] sm:$0xff]  }
 0x12c   :  { %427 = vmatmul.mubr.bf16.vlgmr.msra.gmra.mxu1 %v457_v36 }
 0x1ec   :  { %v316_v38 = vpop.f32.mrf.mxu1 }
 0x1ed   :  { %v317_v39 = vadd.f32 %v355_v37, %v316_v38 }
 0x1ee   :  { %v428_v40 = vpop.f32.mrf.mxu1 }
 0x1ef   :  { %323 = vst [vmem:[#allocation9] sm:$0xff] %v317_v39 }
 0x1f0   :  { %v319_v41 = vpop.f32.mrf.mxu1 }
 0x1f1   :  { %v320_v42 = vadd.f32 %v355_v37, %v319_v41 }
 0x1f2   :  { %v429_v43 = vpop.f32.mrf.mxu1 }
 0x1f3   :  { %324 = vst [vmem:[#allocation9 + $0x8] sm:$0xff] %v320_v42 }
 0x1f4   :  { %533 = shalt.err (!%p530_p5)
}
 0x1f5   :  { %s556_s13 = smov 128   ;;  %s557_s4 = smov 8  }
 0x1f6   :  { %336 = dma.vmem_to_hbm [thread:$0]  %s331_s11, 256, %s611_s5, [#allocation5], %s556_s13, %s556_s13, %s557_s4  }
 0x1f7   :  { %546 = dma.done.wait [#allocation5], 256  }
 0x1f8   :  { %547 = vsyncadd [#allocation5], 4294967040 }
 0x1f9   :  { %340 = vsyncpa [#allocation4], 1 }
 0x1fa   :  { %341 = vsyncpa [#allocation7], 1 }
 0x1fb   :  { %342 = vsyncpa [#allocation5], 1 }

</bundles_post_ra>
